<compile_context>
chip_gen: v5e
topology: v5e:2x2
jax: 0.10.0
libtpu: 0.0.40
codegen_flags: <defaults>
</compile_context>

<pallas_src>
import math
import functools

import numpy as np
import jax
import jax.numpy as jnp
from jax import lax
from jax.experimental import pallas as pl
from jax.experimental.pallas import tpu as pltpu

CONFIG = dict(dim=32, head_dim=16, num_head=2, rp_dim=16, hidden_dim=64,
              dropout_prob=0.1)  # dropout_prob unused at inference (identity)

EPS_FAVOR = 1e-4   # eps inside the FAVOR+ softmax kernel
LN_EPS = 1e-5      # torch.nn.LayerNorm default eps


# ----------------------------- Pallas kernel -------------------------------
def _block_kernel(x_ref, mask_ref,
                  wqkv_ref, bqkv_ref, msel_ref, pbd_ref, dsel_ref,
                  wo_ref, bo_ref, g1_ref, beta1_ref, w1_ref, b1_ref, w2_ref, b2_ref,
                  g2_ref, beta2_ref,
                  o_ref, *, bblk, seq, num_head, head_dim, rp_dim):
    f32, bf16 = jnp.float32, jnp.bfloat16
    N, H, Dh, M = seq, num_head, head_dim, rp_dim
    BN = bblk * N
    HDh, HM, Dv = H * Dh, H * M, Dh + 1
    ratio = M ** -0.5

    x = x_ref[...]                               # (BN, D) f32
    mask = mask_ref[...]                         # (BN, 1) f32
    D = x.shape[-1]

    # ---- fused QKV projection (+ per-head ones column for the denominator fold) ----
    # bf16 operands, f32 accumulation; Dh**-0.5 scale already folded into W_q/W_k.
    qkv = jnp.dot(x.astype(bf16), wqkv_ref[...],
                  preferred_element_type=f32) + bqkv_ref[...]       # (BN, Wtot) f32
    # Column-aware mask blend: msel==1 cols (k, v) scaled by mask; msel==0 cols
    # (q, the per-head ones columns) untouched. One broadcast multiply over the slab.
    blend = 1.0 + msel_ref[...] * (mask - 1.0)                      # (BN, Wtot)
    qkv = qkv * blend

    qk = qkv[:, :2 * HDh]                        # (BN, 2*H*Dh): q unmasked, k masked
    v_aug = qkv[:, 2 * HDh:]                     # (BN, H*(Dh+1)): per-head [v | 1]

    # ---- FAVOR+ features for all heads with one f32 matmul (block-diag projection);
    #      diag terms via a 0/1 selector matmul (lane reduce on MXU). Kept f32: feeds exp.
    feats = jnp.dot(qk, pbd_ref[...], preferred_element_type=f32)          # (BN, 2*H*M)
    diag = 0.5 * jnp.dot(qk * qk, dsel_ref[...], preferred_element_type=f32)  # (BN, 2*H)

    attn = jnp.zeros((BN, D), f32)
    for h in range(H):                           # static unroll over heads (H small)
        qd3 = feats[:, h * M:(h + 1) * M].reshape(bblk, N, M)
        kd3 = feats[:, HM + h * M:HM + (h + 1) * M].reshape(bblk, N, M)
        dq3 = diag[:, h:h + 1].reshape(bblk, N, 1)
        dk3 = diag[:, H + h:H + h + 1].reshape(bblk, N, 1)
        v13 = v_aug[:, h * Dv:(h + 1) * Dv].reshape(bblk, N, Dv)   # (Bblk, N, Dh+1)

        # q': per-row max; k': per-(batch, head) max — both vectorized over the slab.
        qp3 = ratio * (jnp.exp(qd3 - dq3 - jnp.max(qd3, axis=-1, keepdims=True))
                       + EPS_FAVOR)                                 # (Bblk, N, M)
        krow = jnp.max(kd3, axis=-1, keepdims=True)                 # (Bblk, N, 1)
        kmax = jnp.max(krow, axis=-2, keepdims=True)                # (Bblk, 1, 1)
        kp3 = ratio * (jnp.exp(kd3 - dk3 - kmax) + EPS_FAVOR)       # (Bblk, N, M)

        # Non-causal linear attention; denominator folded in via the ones column.
        # Batched dot_general (batch=Bblk), contraction on the row axis (no explicit .T).
        ctx = jnp.einsum('bnm,bnd->bmd', kp3, v13,
                         preferred_element_type=f32)                # (Bblk, M, Dh+1)
        o3 = jnp.einsum('bnm,bmd->bnd', qp3, ctx,
                        preferred_element_type=f32)                 # (Bblk, N, Dh+1)
        out3 = o3[..., :Dh] * pl.reciprocal(o3[..., Dh:], approx=True)
        out_h = out3.reshape(BN, Dh)

        # per-head accumulation replaces lane-axis head concat + single wo matmul
        attn = attn + jnp.dot(out_h.astype(bf16), wo_ref[h], preferred_element_type=f32)

    attn = attn + bo_ref[...]

    # ---- residual + LayerNorm 1 (dropout1 identity at inference) ----
    r1 = x + attn
    mu1 = jnp.mean(r1, axis=-1, keepdims=True)
    var1 = jnp.mean((r1 - mu1) ** 2, axis=-1, keepdims=True)
    n1 = (r1 - mu1) * lax.rsqrt(var1 + LN_EPS) * g1_ref[...] + beta1_ref[...]

    # ---- feed-forward with exact (erf) GELU; bf16 GEMM operands, f32 accumulation ----
    # TODO(synk): switch to tanh-approx GELU (EUP slot) if a bundle dump ever shows the
    # erf VALU polynomial binding after the attention-loop fixes.
    h1 = jnp.dot(n1.astype(bf16), w1_ref[...], preferred_element_type=f32) + b1_ref[...]
    h1 = 0.5 * h1 * (1.0 + lax.erf(h1 * (2.0 ** -0.5)))
    ff = jnp.dot(h1.astype(bf16), w2_ref[...], preferred_element_type=f32) + b2_ref[...]

    # ---- residual + LayerNorm 2 (dropout2 identity at inference) ----
    r2 = n1 + ff
    mu2 = jnp.mean(r2, axis=-1, keepdims=True)
    var2 = jnp.mean((r2 - mu2) ** 2, axis=-1, keepdims=True)
    o_ref[...] = (r2 - mu2) * lax.rsqrt(var2 + LN_EPS) * g2_ref[...] + beta2_ref[...]


def _pick_bblk(B, N, max_rows=2048):
    """Largest divisor of B with Bblk*N <= max_rows rows, while keeping at least two
    grid steps when B >= 2 so the 'parallel' batch axis can shard across v7x's two
    TensorCores. Live intermediates at 2048 rows (D=32, f32) are ~6 MB, inside the
    default scoped VMEM limit on v5e/v6e/v7x."""
    cap = max(1, min(B // 2 if B >= 2 else B, max_rows // max(N, 1)))
    for c in range(cap, 0, -1):
        if B % c == 0:
            return c
    return 1


def performer_block(x, mask, params, cfg):
    B, N, D = x.shape
    H, Dh, M = cfg["num_head"], cfg["head_dim"], cfg["rp_dim"]
    f32, bf16 = jnp.float32, jnp.bfloat16
    HDh, Dv = H * Dh, Dh + 1
    c = Dh ** -0.5  # = (Dh**-0.25 Q/K pre-scale) * (Dh**-0.25 data_normalizer), folded in

    # ---------------- host-side weight prep (free, constant data) ----------------
    # V gets one appended zero-weight / one-bias column per head -> per-head [v | 1],
    # which folds the attention denominator into the context matmul.
    wv_aug = jnp.pad(params["wv"].reshape(D, H, Dh), ((0, 0), (0, 0), (0, 1))
                     ).reshape(D, H * Dv)
    bv_aug = jnp.pad(params["bv"].reshape(1, H, Dh), ((0, 0), (0, 0), (0, 1)),
                     constant_values=1.0).reshape(1, H * Dv)
    wqkv = jnp.concatenate([params["wq"] * c, params["wk"] * c, wv_aug], axis=1).astype(bf16)
    bqkv = jnp.concatenate([params["bq"] * c, params["bk"] * c, bv_aug], axis=1).astype(f32)
    Wtot = 2 * HDh + H * Dv

    # Column selector for the in-kernel mask blend: 1 -> multiply by mask (k and v
    # columns), 0 -> leave untouched (q columns and the per-head ones columns).
    msel_np = np.zeros((1, Wtot), np.float32)
    msel_np[0, HDh:2 * HDh] = 1.0
    for h in range(H):
        msel_np[0, 2 * HDh + h * Dv:2 * HDh + h * Dv + Dh] = 1.0
    msel = jnp.asarray(msel_np)

    # Block-diagonal FAVOR+ projection (q heads then k heads) and 0/1 diag selector.
    proj_t = params["proj"].T.astype(f32)                           # (Dh, M)
    pbd = jnp.zeros((2 * HDh, 2 * H * M), f32)
    dsel_np = np.zeros((2 * HDh, 2 * H), np.float32)
    for h in range(H):
        pbd = pbd.at[h * Dh:(h + 1) * Dh, h * M:(h + 1) * M].set(proj_t)
        pbd = pbd.at[HDh + h * Dh:HDh + (h + 1) * Dh,
                     H * M + h * M:H * M + (h + 1) * M].set(proj_t)
        dsel_np[h * Dh:(h + 1) * Dh, h] = 1.0
        dsel_np[HDh + h * Dh:HDh + (h + 1) * Dh, H + h] = 1.0
    dsel = jnp.asarray(dsel_np)

    wo_h = params["wo"].reshape(H, Dh, D).astype(bf16)              # per-head row blocks
    w1 = params["w1"].astype(bf16)
    w2 = params["w2"].astype(bf16)

    weights = [wqkv, bqkv, msel, pbd, dsel, wo_h, params["bo"],
               params["g1"], params["beta1"], w1, params["b1"],
               w2, params["b2"], params["g2"], params["beta2"]]

    Bblk = _pick_bblk(B, N)
    if (Bblk * N) % 8 != 0 and Bblk != B:
        Bblk = B  # row-slab must be a multiple of 8 sublanes or span the full array
    rows = Bblk * N
    # x/o kept f32 (they feed the residual/LayerNorm path); HBM traffic is negligible
    # at these dims — revisit bf16 I/O only if profiling shows it binding at prod B*N.
    x2 = x.reshape(B * N, D).astype(f32)
    mask2 = mask.reshape(B * N, 1).astype(f32)

    kernel = functools.partial(_block_kernel, bblk=Bblk, seq=N, num_head=H,
                               head_dim=Dh, rp_dim=M)

    def row_spec(cols):
        return pl.BlockSpec((rows, cols), lambda i: (i, 0))

    def full_spec(shape):
        return pl.BlockSpec(shape, lambda i, _n=len(shape): (0,) * _n)

    # TODO(synk): if profiling ever shows masked vst (D=32 < 128 lanes) dominating on
    # v5e, present the output as a lane-dense (rows, N*D) slab wrapper-side.
    out = pl.pallas_call(
        kernel,
        out_shape=jax.ShapeDtypeStruct((B * N, D), f32),
        grid_spec=pltpu.PrefetchScalarGridSpec(
            num_scalar_prefetch=0,
            grid=(B // Bblk,),
            in_specs=[row_spec(D), row_spec(1)] + [full_spec(tuple(w.shape)) for w in weights],
            out_specs=row_spec(D),
        ),
        compiler_params=pltpu.CompilerParams(dimension_semantics=("parallel",)),
    )(x2, mask2, *weights)
    return out.reshape(B, N, D)


# ---------------------------- parameter init -------------------------------
def init_params(key, cfg):
    D, H, Dh = cfg["dim"], cfg["num_head"], cfg["head_dim"]
    M, Hd = cfg["rp_dim"], cfg["hidden_dim"]
    ks = jax.random.split(key, 8)

    def lin(k, fi, fo):  # torch.nn.Linear-style uniform init, stored (in, out)
        kw, kb = jax.random.split(k)
        bound = 1.0 / math.sqrt(fi)
        return (jax.random.uniform(kw, (fi, fo), jnp.float32, -bound, bound),
                jax.random.uniform(kb, (1, fo), jnp.float32, -bound, bound))

    p = {}
    p["wq"], p["bq"] = lin(ks[0], D, H * Dh)
    p["wk"], p["bk"] = lin(ks[1], D, H * Dh)
    p["wv"], p["bv"] = lin(ks[2], D, H * Dh)
    p["wo"], p["bo"] = lin(ks[3], H * Dh, D)
    p["w1"], p["b1"] = lin(ks[4], D, Hd)
    p["w2"], p["b2"] = lin(ks[5], Hd, D)
    # FAVOR+ gaussian orthogonal random matrix (scaling=0): orthonormal rows * chi norms
    g = jax.random.normal(ks[6], (Dh, Dh), jnp.float32)
    qmat, _ = jnp.linalg.qr(g)
    norms = jnp.linalg.norm(jax.random.normal(ks[7], (M, Dh), jnp.float32), axis=-1)
    p["proj"] = (qmat.T[:M, :] * norms[:, None]).astype(jnp.float32)     # (M, Dh)
    p["g1"] = jnp.ones((1, D), jnp.float32)
    p["beta1"] = jnp.zeros((1, D), jnp.float32)
    p["g2"] = jnp.ones((1, D), jnp.float32)
    p["beta2"] = jnp.zeros((1, D), jnp.float32)
    return p


# --------------------------- pure-JAX reference ----------------------------
def reference_block(x, mask, p, cfg):
    B, N, D = x.shape
    H, Dh, M = cfg["num_head"], cfg["head_dim"], cfg["rp_dim"]
    hp = lax.Precision.HIGHEST

    def linear(a, w, b):
        return jnp.dot(a, w, precision=hp) + b

    def split_heads(a):
        return a.reshape(B, N, H, Dh).transpose(0, 2, 1, 3)

    q = split_heads(linear(x, p["wq"], p["bq"]))
    k = split_heads(linear(x, p["wk"], p["bk"]))
    v = split_heads(linear(x, p["wv"], p["bv"]))

    scale = Dh ** -0.25
    m = mask[:, None, :, None]
    q, k, v = q * scale, k * scale * m, v * m

    normalizer, ratio = Dh ** -0.25, M ** -0.5
    proj = p["proj"]
    qd = jnp.einsum("bhnd,md->bhnm", q * normalizer, proj, precision=hp)
    kd = jnp.einsum("bhnd,md->bhnm", k * normalizer, proj, precision=hp)
    diag_q = 0.5 * normalizer ** 2 * jnp.sum(q * q, -1, keepdims=True)
    diag_k = 0.5 * normalizer ** 2 * jnp.sum(k * k, -1, keepdims=True)
    qp = ratio * (jnp.exp(qd - diag_q - jnp.max(qd, -1, keepdims=True)) + EPS_FAVOR)
    kp = ratio * (jnp.exp(kd - diag_k - jnp.max(kd, axis=(-1, -2), keepdims=True)) + EPS_FAVOR)

    k_cumsum = jnp.sum(kp, axis=-2)
    d_inv = 1.0 / jnp.einsum("bhnm,bhm->bhn", qp, k_cumsum, precision=hp)
    context = jnp.einsum("bhnm,bhnd->bhmd", kp, v, precision=hp)
    out = jnp.einsum("bhnm,bhmd->bhnd", qp, context, precision=hp) * d_inv[..., None]

    attn = out.transpose(0, 2, 1, 3).reshape(B, N, H * Dh)
    attn = linear(attn, p["wo"], p["bo"])

    def ln(a, g, b):
        mu = a.mean(-1, keepdims=True)
        var = ((a - mu) ** 2).mean(-1, keepdims=True)
        return (a - mu) / jnp.sqrt(var + LN_EPS) * g + b

    n1 = ln(x + attn, p["g1"], p["beta1"])
    h1 = linear(n1, p["w1"], p["b1"])
    h1 = 0.5 * h1 * (1.0 + lax.erf(h1 / jnp.sqrt(2.0)))
    ff = linear(h1, p["w2"], p["b2"])
    return ln(n1 + ff, p["g2"], p["beta2"])


# --------------------------------- main -------------------------------------
if __name__ == "__main__":
    key = jax.random.PRNGKey(0)
    kx, kp = jax.random.split(key, 2)
    B, N, D = 2, 8, CONFIG["dim"]

    x = jax.random.normal(kx, (B, N, D), jnp.float32)
    mask = jnp.ones((B, N), jnp.float32).at[1, 5:].set(0.0)  # second sequence padded
    params = init_params(kp, CONFIG)

    out = performer_block(x, mask, params, CONFIG)
    out = jax.block_until_ready(out)

    ref = reference_block(x, mask, params, CONFIG)
    assert out.shape == (B, N, D)
    max_err = float(jnp.max(jnp.abs(out - ref)))
    assert max_err < 5e-2, f"mismatch vs reference: {max_err}"
    print("KERNEL_OK")
</pallas_src>

<mosaic_0001>
module attributes {stable_mosaic.version = 11 : i64} {
  func.func @_block_kernel(%arg0: i32, %arg1: memref<8x32xf32, #tpu.memory_space<vmem>>, %arg2: memref<8x1xf32, #tpu.memory_space<vmem>>, %arg3: memref<32x98xbf16, #tpu.memory_space<vmem>>, %arg4: memref<1x98xf32, #tpu.memory_space<vmem>>, %arg5: memref<1x98xf32, #tpu.memory_space<vmem>>, %arg6: memref<64x64xf32, #tpu.memory_space<vmem>>, %arg7: memref<64x4xf32, #tpu.memory_space<vmem>>, %arg8: memref<2x16x32xbf16, #tpu.memory_space<vmem>>, %arg9: memref<1x32xf32, #tpu.memory_space<vmem>>, %arg10: memref<1x32xf32, #tpu.memory_space<vmem>>, %arg11: memref<1x32xf32, #tpu.memory_space<vmem>>, %arg12: memref<32x64xbf16, #tpu.memory_space<vmem>>, %arg13: memref<1x64xf32, #tpu.memory_space<vmem>>, %arg14: memref<64x32xbf16, #tpu.memory_space<vmem>>, %arg15: memref<1x32xf32, #tpu.memory_space<vmem>>, %arg16: memref<1x32xf32, #tpu.memory_space<vmem>>, %arg17: memref<1x32xf32, #tpu.memory_space<vmem>>, %arg18: memref<8x32xf32, #tpu.memory_space<vmem>>) attributes {dimension_semantics = [#tpu.dimension_semantics<parallel>], iteration_bounds = array<i64: 2>, scalar_prefetch = 0 : i64, scratch_operands = 0 : i64, tpu.core_type = #tpu.core_type<tc>, window_params = [{transform_indices = @transform_0, window_bounds = array<i64: 8, 32>}, {transform_indices = @transform_1, window_bounds = array<i64: 8, 1>}, {pipeline_mode = #tpu.pipeline_mode<synchronous>, transform_indices = @transform_2, window_bounds = array<i64: 32, 98>}, {pipeline_mode = #tpu.pipeline_mode<synchronous>, transform_indices = @transform_3, window_bounds = array<i64: 1, 98>}, {pipeline_mode = #tpu.pipeline_mode<synchronous>, transform_indices = @transform_4, window_bounds = array<i64: 1, 98>}, {pipeline_mode = #tpu.pipeline_mode<synchronous>, transform_indices = @transform_5, window_bounds = array<i64: 64, 64>}, {pipeline_mode = #tpu.pipeline_mode<synchronous>, transform_indices = @transform_6, window_bounds = array<i64: 64, 4>}, {pipeline_mode = #tpu.pipeline_mode<synchronous>, transform_indices = @transform_7, window_bounds = array<i64: 2, 16, 32>}, {pipeline_mode = #tpu.pipeline_mode<synchronous>, transform_indices = @transform_8, window_bounds = array<i64: 1, 32>}, {pipeline_mode = #tpu.pipeline_mode<synchronous>, transform_indices = @transform_9, window_bounds = array<i64: 1, 32>}, {pipeline_mode = #tpu.pipeline_mode<synchronous>, transform_indices = @transform_10, window_bounds = array<i64: 1, 32>}, {pipeline_mode = #tpu.pipeline_mode<synchronous>, transform_indices = @transform_11, window_bounds = array<i64: 32, 64>}, {pipeline_mode = #tpu.pipeline_mode<synchronous>, transform_indices = @transform_12, window_bounds = array<i64: 1, 64>}, {pipeline_mode = #tpu.pipeline_mode<synchronous>, transform_indices = @transform_13, window_bounds = array<i64: 64, 32>}, {pipeline_mode = #tpu.pipeline_mode<synchronous>, transform_indices = @transform_14, window_bounds = array<i64: 1, 32>}, {pipeline_mode = #tpu.pipeline_mode<synchronous>, transform_indices = @transform_15, window_bounds = array<i64: 1, 32>}, {pipeline_mode = #tpu.pipeline_mode<synchronous>, transform_indices = @transform_16, window_bounds = array<i64: 1, 32>}, {transform_indices = @transform_17, window_bounds = array<i64: 8, 32>}]} {
    %c0 = arith.constant 0 : index
    %c0_0 = arith.constant 0 : index
    %0 = vector.load %arg1[%c0, %c0_0] : memref<8x32xf32, #tpu.memory_space<vmem>>, vector<8x32xf32>
    %c0_1 = arith.constant 0 : index
    %c0_2 = arith.constant 0 : index
    %1 = vector.load %arg2[%c0_1, %c0_2] : memref<8x1xf32, #tpu.memory_space<vmem>>, vector<8x1xf32>
    %2 = arith.truncf %0 : vector<8x32xf32> to vector<8x32xbf16>
    %c0_3 = arith.constant 0 : index
    %c0_4 = arith.constant 0 : index
    %3 = vector.load %arg3[%c0_3, %c0_4] : memref<32x98xbf16, #tpu.memory_space<vmem>>, vector<32x98xbf16>
    %cst = arith.constant dense<0.000000e+00> : vector<8x98xf32>
    %4 = tpu.matmul %2, %3, %cst {dimension_numbers = #tpu.dot_dimension_numbers<[1], [0], [0], [1], [0, 0, 1, 1], [], []>} : vector<8x32xbf16>, vector<32x98xbf16>, vector<8x98xf32> -> vector<8x98xf32>
    %c0_5 = arith.constant 0 : index
    %c0_6 = arith.constant 0 : index
    %5 = vector.load %arg4[%c0_5, %c0_6] : memref<1x98xf32, #tpu.memory_space<vmem>>, vector<1x98xf32>
    %6 = vector.broadcast %5 : vector<1x98xf32> to vector<8x98xf32>
    %7 = arith.addf %4, %6 : vector<8x98xf32>
    %c0_7 = arith.constant 0 : index
    %c0_8 = arith.constant 0 : index
    %8 = vector.load %arg5[%c0_7, %c0_8] : memref<1x98xf32, #tpu.memory_space<vmem>>, vector<1x98xf32>
    %cst_9 = arith.constant 1.000000e+00 : f32
    %9 = vector.broadcast %cst_9 : f32 to vector<8x1xf32>
    %10 = arith.subf %1, %9 : vector<8x1xf32>
    %11 = vector.broadcast %8 : vector<1x98xf32> to vector<8x98xf32>
    %12 = vector.broadcast %10 : vector<8x1xf32> to vector<8x98xf32>
    %13 = arith.mulf %11, %12 : vector<8x98xf32>
    %cst_10 = arith.constant 1.000000e+00 : f32
    %14 = vector.broadcast %cst_10 : f32 to vector<8x98xf32>
    %15 = arith.addf %14, %13 : vector<8x98xf32>
    %16 = arith.mulf %7, %15 : vector<8x98xf32>
    %17 = vector.extract_strided_slice %16 {offsets = [0, 0], sizes = [8, 64], strides = [1, 1]} : vector<8x98xf32> to vector<8x64xf32>
    %18 = vector.extract_strided_slice %16 {offsets = [0, 64], sizes = [8, 34], strides = [1, 1]} : vector<8x98xf32> to vector<8x34xf32>
    %c0_11 = arith.constant 0 : index
    %c0_12 = arith.constant 0 : index
    %19 = vector.load %arg6[%c0_11, %c0_12] : memref<64x64xf32, #tpu.memory_space<vmem>>, vector<64x64xf32>
    %cst_13 = arith.constant dense<0.000000e+00> : vector<8x64xf32>
    %20 = tpu.matmul %17, %19, %cst_13 {dimension_numbers = #tpu.dot_dimension_numbers<[1], [0], [0], [1], [0, 0, 1, 1], [], []>} : vector<8x64xf32>, vector<64x64xf32>, vector<8x64xf32> -> vector<8x64xf32>
    %21 = arith.mulf %17, %17 : vector<8x64xf32>
    %c0_14 = arith.constant 0 : index
    %c0_15 = arith.constant 0 : index
    %22 = vector.load %arg7[%c0_14, %c0_15] : memref<64x4xf32, #tpu.memory_space<vmem>>, vector<64x4xf32>
    %cst_16 = arith.constant dense<0.000000e+00> : vector<8x4xf32>
    %23 = tpu.matmul %21, %22, %cst_16 {dimension_numbers = #tpu.dot_dimension_numbers<[1], [0], [0], [1], [0, 0, 1, 1], [], []>} : vector<8x64xf32>, vector<64x4xf32>, vector<8x4xf32> -> vector<8x4xf32>
    %cst_17 = arith.constant 5.000000e-01 : f32
    %24 = vector.broadcast %cst_17 : f32 to vector<8x4xf32>
    %25 = arith.mulf %24, %23 : vector<8x4xf32>
    %cst_18 = arith.constant 0.000000e+00 : f32
    %26 = vector.broadcast %cst_18 : f32 to vector<8x32xf32>
    %27 = vector.extract_strided_slice %20 {offsets = [0, 0], sizes = [8, 16], strides = [1, 1]} : vector<8x64xf32> to vector<8x16xf32>
    %28 = vector.shape_cast %27 : vector<8x16xf32> to vector<1x8x16xf32>
    %29 = vector.extract_strided_slice %20 {offsets = [0, 32], sizes = [8, 16], strides = [1, 1]} : vector<8x64xf32> to vector<8x16xf32>
    %30 = vector.shape_cast %29 : vector<8x16xf32> to vector<1x8x16xf32>
    %31 = vector.extract_strided_slice %25 {offsets = [0, 0], sizes = [8, 1], strides = [1, 1]} : vector<8x4xf32> to vector<8x1xf32>
    %32 = vector.shape_cast %31 : vector<8x1xf32> to vector<1x8x1xf32>
    %33 = vector.extract_strided_slice %25 {offsets = [0, 2], sizes = [8, 1], strides = [1, 1]} : vector<8x4xf32> to vector<8x1xf32>
    %34 = vector.shape_cast %33 : vector<8x1xf32> to vector<1x8x1xf32>
    %35 = vector.extract_strided_slice %18 {offsets = [0, 0], sizes = [8, 17], strides = [1, 1]} : vector<8x34xf32> to vector<8x17xf32>
    %36 = vector.shape_cast %35 : vector<8x17xf32> to vector<1x8x17xf32>
    %37 = vector.broadcast %32 : vector<1x8x1xf32> to vector<1x8x16xf32>
    %38 = arith.subf %28, %37 : vector<1x8x16xf32>
    %cst_19 = arith.constant dense<0xFF800000> : vector<1x8xf32>
    %39 = vector.multi_reduction <maximumf>, %28, %cst_19 [2] : vector<1x8x16xf32> to vector<1x8xf32>
    %40 = vector.shape_cast %39 : vector<1x8xf32> to vector<1x8x1xf32>
    %41 = vector.broadcast %40 : vector<1x8x1xf32> to vector<1x8x16xf32>
    %42 = arith.subf %38, %41 : vector<1x8x16xf32>
    %43 = math.exp %42 : vector<1x8x16xf32>
    %cst_20 = arith.constant 9.99999974E-5 : f32
    %44 = vector.broadcast %cst_20 : f32 to vector<1x8x16xf32>
    %45 = arith.addf %43, %44 : vector<1x8x16xf32>
    %cst_21 = arith.constant 2.500000e-01 : f32
    %46 = vector.broadcast %cst_21 : f32 to vector<1x8x16xf32>
    %47 = arith.mulf %46, %45 : vector<1x8x16xf32>
    %cst_22 = arith.constant dense<0xFF800000> : vector<1x8xf32>
    %48 = vector.multi_reduction <maximumf>, %30, %cst_22 [2] : vector<1x8x16xf32> to vector<1x8xf32>
    %49 = vector.shape_cast %48 : vector<1x8xf32> to vector<1x8x1xf32>
    %cst_23 = arith.constant dense<0xFF800000> : vector<1x1xf32>
    %50 = vector.multi_reduction <maximumf>, %49, %cst_23 [1] : vector<1x8x1xf32> to vector<1x1xf32>
    %51 = vector.shape_cast %50 : vector<1x1xf32> to vector<1x1x1xf32>
    %52 = vector.broadcast %34 : vector<1x8x1xf32> to vector<1x8x16xf32>
    %53 = arith.subf %30, %52 : vector<1x8x16xf32>
    %54 = vector.broadcast %51 : vector<1x1x1xf32> to vector<1x8x16xf32>
    %55 = arith.subf %53, %54 : vector<1x8x16xf32>
    %56 = math.exp %55 : vector<1x8x16xf32>
    %cst_24 = arith.constant 9.99999974E-5 : f32
    %57 = vector.broadcast %cst_24 : f32 to vector<1x8x16xf32>
    %58 = arith.addf %56, %57 : vector<1x8x16xf32>
    %cst_25 = arith.constant 2.500000e-01 : f32
    %59 = vector.broadcast %cst_25 : f32 to vector<1x8x16xf32>
    %60 = arith.mulf %59, %58 : vector<1x8x16xf32>
    "tpu.trace_start"() <{level = 10 : i32, message = "bnm,bnd->bmd"}> : () -> ()
    %cst_26 = arith.constant dense<0.000000e+00> : vector<1x16x17xf32>
    %61 = tpu.matmul %60, %36, %cst_26 {dimension_numbers = #tpu.dot_dimension_numbers<[1], [1], [2], [2], [0, 0, 0, 2, 1, 2], [0], [0]>} : vector<1x8x16xf32>, vector<1x8x17xf32>, vector<1x16x17xf32> -> vector<1x16x17xf32>
    "tpu.trace_stop"() : () -> ()
    "tpu.trace_start"() <{level = 10 : i32, message = "bnm,bmd->bnd"}> : () -> ()
    %cst_27 = arith.constant dense<0.000000e+00> : vector<1x8x17xf32>
    %62 = tpu.matmul %47, %61, %cst_27 {dimension_numbers = #tpu.dot_dimension_numbers<[2], [1], [1], [2], [0, 0, 0, 1, 1, 2], [0], [0]>} : vector<1x8x16xf32>, vector<1x16x17xf32>, vector<1x8x17xf32> -> vector<1x8x17xf32>
    "tpu.trace_stop"() : () -> ()
    %63 = vector.extract_strided_slice %62 {offsets = [0, 0, 0], sizes = [1, 8, 16], strides = [1, 1, 1]} : vector<1x8x17xf32> to vector<1x8x16xf32>
    %64 = vector.extract_strided_slice %62 {offsets = [0, 0, 16], sizes = [1, 8, 1], strides = [1, 1, 1]} : vector<1x8x17xf32> to vector<1x8x1xf32>
    %65 = tpu.reciprocal %64 {approx = true} : vector<1x8x1xf32> -> vector<1x8x1xf32>
    %66 = vector.broadcast %65 : vector<1x8x1xf32> to vector<1x8x16xf32>
    %67 = arith.mulf %63, %66 : vector<1x8x16xf32>
    %68 = vector.shape_cast %67 : vector<1x8x16xf32> to vector<8x16xf32>
    %69 = arith.truncf %68 : vector<8x16xf32> to vector<8x16xbf16>
    %c0_28 = arith.constant 0 : index
    %c0_29 = arith.constant 0 : index
    %c0_30 = arith.constant 0 : index
    %70 = vector.load %arg8[%c0_28, %c0_29, %c0_30] : memref<2x16x32xbf16, #tpu.memory_space<vmem>>, vector<1x16x32xbf16>
    %71 = vector.shape_cast %70 : vector<1x16x32xbf16> to vector<16x32xbf16>
    %cst_31 = arith.constant dense<0.000000e+00> : vector<8x32xf32>
    %72 = tpu.matmul %69, %71, %cst_31 {dimension_numbers = #tpu.dot_dimension_numbers<[1], [0], [0], [1], [0, 0, 1, 1], [], []>} : vector<8x16xbf16>, vector<16x32xbf16>, vector<8x32xf32> -> vector<8x32xf32>
    %73 = arith.addf %26, %72 : vector<8x32xf32>
    %74 = vector.extract_strided_slice %20 {offsets = [0, 16], sizes = [8, 16], strides = [1, 1]} : vector<8x64xf32> to vector<8x16xf32>
    %75 = vector.shape_cast %74 : vector<8x16xf32> to vector<1x8x16xf32>
    %76 = vector.extract_strided_slice %20 {offsets = [0, 48], sizes = [8, 16], strides = [1, 1]} : vector<8x64xf32> to vector<8x16xf32>
    %77 = vector.shape_cast %76 : vector<8x16xf32> to vector<1x8x16xf32>
    %78 = vector.extract_strided_slice %25 {offsets = [0, 1], sizes = [8, 1], strides = [1, 1]} : vector<8x4xf32> to vector<8x1xf32>
    %79 = vector.shape_cast %78 : vector<8x1xf32> to vector<1x8x1xf32>
    %80 = vector.extract_strided_slice %25 {offsets = [0, 3], sizes = [8, 1], strides = [1, 1]} : vector<8x4xf32> to vector<8x1xf32>
    %81 = vector.shape_cast %80 : vector<8x1xf32> to vector<1x8x1xf32>
    %82 = vector.extract_strided_slice %18 {offsets = [0, 17], sizes = [8, 17], strides = [1, 1]} : vector<8x34xf32> to vector<8x17xf32>
    %83 = vector.shape_cast %82 : vector<8x17xf32> to vector<1x8x17xf32>
    %84 = vector.broadcast %79 : vector<1x8x1xf32> to vector<1x8x16xf32>
    %85 = arith.subf %75, %84 : vector<1x8x16xf32>
    %cst_32 = arith.constant dense<0xFF800000> : vector<1x8xf32>
    %86 = vector.multi_reduction <maximumf>, %75, %cst_32 [2] : vector<1x8x16xf32> to vector<1x8xf32>
    %87 = vector.shape_cast %86 : vector<1x8xf32> to vector<1x8x1xf32>
    %88 = vector.broadcast %87 : vector<1x8x1xf32> to vector<1x8x16xf32>
    %89 = arith.subf %85, %88 : vector<1x8x16xf32>
    %90 = math.exp %89 : vector<1x8x16xf32>
    %cst_33 = arith.constant 9.99999974E-5 : f32
    %91 = vector.broadcast %cst_33 : f32 to vector<1x8x16xf32>
    %92 = arith.addf %90, %91 : vector<1x8x16xf32>
    %cst_34 = arith.constant 2.500000e-01 : f32
    %93 = vector.broadcast %cst_34 : f32 to vector<1x8x16xf32>
    %94 = arith.mulf %93, %92 : vector<1x8x16xf32>
    %cst_35 = arith.constant dense<0xFF800000> : vector<1x8xf32>
    %95 = vector.multi_reduction <maximumf>, %77, %cst_35 [2] : vector<1x8x16xf32> to vector<1x8xf32>
    %96 = vector.shape_cast %95 : vector<1x8xf32> to vector<1x8x1xf32>
    %cst_36 = arith.constant dense<0xFF800000> : vector<1x1xf32>
    %97 = vector.multi_reduction <maximumf>, %96, %cst_36 [1] : vector<1x8x1xf32> to vector<1x1xf32>
    %98 = vector.shape_cast %97 : vector<1x1xf32> to vector<1x1x1xf32>
    %99 = vector.broadcast %81 : vector<1x8x1xf32> to vector<1x8x16xf32>
    %100 = arith.subf %77, %99 : vector<1x8x16xf32>
    %101 = vector.broadcast %98 : vector<1x1x1xf32> to vector<1x8x16xf32>
    %102 = arith.subf %100, %101 : vector<1x8x16xf32>
    %103 = math.exp %102 : vector<1x8x16xf32>
    %cst_37 = arith.constant 9.99999974E-5 : f32
    %104 = vector.broadcast %cst_37 : f32 to vector<1x8x16xf32>
    %105 = arith.addf %103, %104 : vector<1x8x16xf32>
    %cst_38 = arith.constant 2.500000e-01 : f32
    %106 = vector.broadcast %cst_38 : f32 to vector<1x8x16xf32>
    %107 = arith.mulf %106, %105 : vector<1x8x16xf32>
    "tpu.trace_start"() <{level = 10 : i32, message = "bnm,bnd->bmd"}> : () -> ()
    %cst_39 = arith.constant dense<0.000000e+00> : vector<1x16x17xf32>
    %108 = tpu.matmul %107, %83, %cst_39 {dimension_numbers = #tpu.dot_dimension_numbers<[1], [1], [2], [2], [0, 0, 0, 2, 1, 2], [0], [0]>} : vector<1x8x16xf32>, vector<1x8x17xf32>, vector<1x16x17xf32> -> vector<1x16x17xf32>
    "tpu.trace_stop"() : () -> ()
    "tpu.trace_start"() <{level = 10 : i32, message = "bnm,bmd->bnd"}> : () -> ()
    %cst_40 = arith.constant dense<0.000000e+00> : vector<1x8x17xf32>
    %109 = tpu.matmul %94, %108, %cst_40 {dimension_numbers = #tpu.dot_dimension_numbers<[2], [1], [1], [2], [0, 0, 0, 1, 1, 2], [0], [0]>} : vector<1x8x16xf32>, vector<1x16x17xf32>, vector<1x8x17xf32> -> vector<1x8x17xf32>
    "tpu.trace_stop"() : () -> ()
    %110 = vector.extract_strided_slice %109 {offsets = [0, 0, 0], sizes = [1, 8, 16], strides = [1, 1, 1]} : vector<1x8x17xf32> to vector<1x8x16xf32>
    %111 = vector.extract_strided_slice %109 {offsets = [0, 0, 16], sizes = [1, 8, 1], strides = [1, 1, 1]} : vector<1x8x17xf32> to vector<1x8x1xf32>
    %112 = tpu.reciprocal %111 {approx = true} : vector<1x8x1xf32> -> vector<1x8x1xf32>
    %113 = vector.broadcast %112 : vector<1x8x1xf32> to vector<1x8x16xf32>
    %114 = arith.mulf %110, %113 : vector<1x8x16xf32>
    %115 = vector.shape_cast %114 : vector<1x8x16xf32> to vector<8x16xf32>
    %116 = arith.truncf %115 : vector<8x16xf32> to vector<8x16xbf16>
    %c1 = arith.constant 1 : index
    %c0_41 = arith.constant 0 : index
    %c0_42 = arith.constant 0 : index
    %117 = vector.load %arg8[%c1, %c0_41, %c0_42] : memref<2x16x32xbf16, #tpu.memory_space<vmem>>, vector<1x16x32xbf16>
    %118 = vector.shape_cast %117 : vector<1x16x32xbf16> to vector<16x32xbf16>
    %cst_43 = arith.constant dense<0.000000e+00> : vector<8x32xf32>
    %119 = tpu.matmul %116, %118, %cst_43 {dimension_numbers = #tpu.dot_dimension_numbers<[1], [0], [0], [1], [0, 0, 1, 1], [], []>} : vector<8x16xbf16>, vector<16x32xbf16>, vector<8x32xf32> -> vector<8x32xf32>
    %120 = arith.addf %73, %119 : vector<8x32xf32>
    %c0_44 = arith.constant 0 : index
    %c0_45 = arith.constant 0 : index
    %121 = vector.load %arg9[%c0_44, %c0_45] : memref<1x32xf32, #tpu.memory_space<vmem>>, vector<1x32xf32>
    %122 = vector.broadcast %121 : vector<1x32xf32> to vector<8x32xf32>
    %123 = arith.addf %120, %122 : vector<8x32xf32>
    %124 = arith.addf %0, %123 : vector<8x32xf32>
    %cst_46 = arith.constant dense<0.000000e+00> : vector<8xf32>
    %125 = vector.multi_reduction <add>, %124, %cst_46 [1] : vector<8x32xf32> to vector<8xf32>
    %126 = vector.shape_cast %125 : vector<8xf32> to vector<8x1xf32>
    %cst_47 = arith.constant 3.200000e+01 : f32
    %127 = vector.broadcast %cst_47 : f32 to vector<8x1xf32>
    %128 = arith.divf %126, %127 : vector<8x1xf32>
    %129 = vector.broadcast %128 : vector<8x1xf32> to vector<8x32xf32>
    %130 = arith.subf %124, %129 : vector<8x32xf32>
    %131 = arith.mulf %130, %130 : vector<8x32xf32>
    %cst_48 = arith.constant dense<0.000000e+00> : vector<8xf32>
    %132 = vector.multi_reduction <add>, %131, %cst_48 [1] : vector<8x32xf32> to vector<8xf32>
    %133 = vector.shape_cast %132 : vector<8xf32> to vector<8x1xf32>
    %cst_49 = arith.constant 3.200000e+01 : f32
    %134 = vector.broadcast %cst_49 : f32 to vector<8x1xf32>
    %135 = arith.divf %133, %134 : vector<8x1xf32>
    %136 = vector.broadcast %128 : vector<8x1xf32> to vector<8x32xf32>
    %137 = arith.subf %124, %136 : vector<8x32xf32>
    %cst_50 = arith.constant 9.99999974E-6 : f32
    %138 = vector.broadcast %cst_50 : f32 to vector<8x1xf32>
    %139 = arith.addf %135, %138 : vector<8x1xf32>
    %140 = math.rsqrt %139 : vector<8x1xf32>
    %141 = vector.broadcast %140 : vector<8x1xf32> to vector<8x32xf32>
    %142 = arith.mulf %137, %141 : vector<8x32xf32>
    %c0_51 = arith.constant 0 : index
    %c0_52 = arith.constant 0 : index
    %143 = vector.load %arg10[%c0_51, %c0_52] : memref<1x32xf32, #tpu.memory_space<vmem>>, vector<1x32xf32>
    %144 = vector.broadcast %143 : vector<1x32xf32> to vector<8x32xf32>
    %145 = arith.mulf %142, %144 : vector<8x32xf32>
    %c0_53 = arith.constant 0 : index
    %c0_54 = arith.constant 0 : index
    %146 = vector.load %arg11[%c0_53, %c0_54] : memref<1x32xf32, #tpu.memory_space<vmem>>, vector<1x32xf32>
    %147 = vector.broadcast %146 : vector<1x32xf32> to vector<8x32xf32>
    %148 = arith.addf %145, %147 : vector<8x32xf32>
    %149 = arith.truncf %148 : vector<8x32xf32> to vector<8x32xbf16>
    %c0_55 = arith.constant 0 : index
    %c0_56 = arith.constant 0 : index
    %150 = vector.load %arg12[%c0_55, %c0_56] : memref<32x64xbf16, #tpu.memory_space<vmem>>, vector<32x64xbf16>
    %cst_57 = arith.constant dense<0.000000e+00> : vector<8x64xf32>
    %151 = tpu.matmul %149, %150, %cst_57 {dimension_numbers = #tpu.dot_dimension_numbers<[1], [0], [0], [1], [0, 0, 1, 1], [], []>} : vector<8x32xbf16>, vector<32x64xbf16>, vector<8x64xf32> -> vector<8x64xf32>
    %c0_58 = arith.constant 0 : index
    %c0_59 = arith.constant 0 : index
    %152 = vector.load %arg13[%c0_58, %c0_59] : memref<1x64xf32, #tpu.memory_space<vmem>>, vector<1x64xf32>
    %153 = vector.broadcast %152 : vector<1x64xf32> to vector<8x64xf32>
    %154 = arith.addf %151, %153 : vector<8x64xf32>
    %cst_60 = arith.constant 5.000000e-01 : f32
    %155 = vector.broadcast %cst_60 : f32 to vector<8x64xf32>
    %156 = arith.mulf %155, %154 : vector<8x64xf32>
    %cst_61 = arith.constant 0.707106769 : f32
    %157 = vector.broadcast %cst_61 : f32 to vector<8x64xf32>
    %158 = arith.mulf %154, %157 : vector<8x64xf32>
    %159 = math.erf %158 : vector<8x64xf32>
    %cst_62 = arith.constant 1.000000e+00 : f32
    %160 = vector.broadcast %cst_62 : f32 to vector<8x64xf32>
    %161 = arith.addf %160, %159 : vector<8x64xf32>
    %162 = arith.mulf %156, %161 : vector<8x64xf32>
    %163 = arith.truncf %162 : vector<8x64xf32> to vector<8x64xbf16>
    %c0_63 = arith.constant 0 : index
    %c0_64 = arith.constant 0 : index
    %164 = vector.load %arg14[%c0_63, %c0_64] : memref<64x32xbf16, #tpu.memory_space<vmem>>, vector<64x32xbf16>
    %cst_65 = arith.constant dense<0.000000e+00> : vector<8x32xf32>
    %165 = tpu.matmul %163, %164, %cst_65 {dimension_numbers = #tpu.dot_dimension_numbers<[1], [0], [0], [1], [0, 0, 1, 1], [], []>} : vector<8x64xbf16>, vector<64x32xbf16>, vector<8x32xf32> -> vector<8x32xf32>
    %c0_66 = arith.constant 0 : index
    %c0_67 = arith.constant 0 : index
    %166 = vector.load %arg15[%c0_66, %c0_67] : memref<1x32xf32, #tpu.memory_space<vmem>>, vector<1x32xf32>
    %167 = vector.broadcast %166 : vector<1x32xf32> to vector<8x32xf32>
    %168 = arith.addf %165, %167 : vector<8x32xf32>
    %169 = arith.addf %148, %168 : vector<8x32xf32>
    %cst_68 = arith.constant dense<0.000000e+00> : vector<8xf32>
    %170 = vector.multi_reduction <add>, %169, %cst_68 [1] : vector<8x32xf32> to vector<8xf32>
    %171 = vector.shape_cast %170 : vector<8xf32> to vector<8x1xf32>
    %cst_69 = arith.constant 3.200000e+01 : f32
    %172 = vector.broadcast %cst_69 : f32 to vector<8x1xf32>
    %173 = arith.divf %171, %172 : vector<8x1xf32>
    %174 = vector.broadcast %173 : vector<8x1xf32> to vector<8x32xf32>
    %175 = arith.subf %169, %174 : vector<8x32xf32>
    %176 = arith.mulf %175, %175 : vector<8x32xf32>
    %cst_70 = arith.constant dense<0.000000e+00> : vector<8xf32>
    %177 = vector.multi_reduction <add>, %176, %cst_70 [1] : vector<8x32xf32> to vector<8xf32>
    %178 = vector.shape_cast %177 : vector<8xf32> to vector<8x1xf32>
    %cst_71 = arith.constant 3.200000e+01 : f32
    %179 = vector.broadcast %cst_71 : f32 to vector<8x1xf32>
    %180 = arith.divf %178, %179 : vector<8x1xf32>
    %181 = vector.broadcast %173 : vector<8x1xf32> to vector<8x32xf32>
    %182 = arith.subf %169, %181 : vector<8x32xf32>
    %cst_72 = arith.constant 9.99999974E-6 : f32
    %183 = vector.broadcast %cst_72 : f32 to vector<8x1xf32>
    %184 = arith.addf %180, %183 : vector<8x1xf32>
    %185 = math.rsqrt %184 : vector<8x1xf32>
    %186 = vector.broadcast %185 : vector<8x1xf32> to vector<8x32xf32>
    %187 = arith.mulf %182, %186 : vector<8x32xf32>
    %c0_73 = arith.constant 0 : index
    %c0_74 = arith.constant 0 : index
    %188 = vector.load %arg16[%c0_73, %c0_74] : memref<1x32xf32, #tpu.memory_space<vmem>>, vector<1x32xf32>
    %189 = vector.broadcast %188 : vector<1x32xf32> to vector<8x32xf32>
    %190 = arith.mulf %187, %189 : vector<8x32xf32>
    %c0_75 = arith.constant 0 : index
    %c0_76 = arith.constant 0 : index
    %191 = vector.load %arg17[%c0_75, %c0_76] : memref<1x32xf32, #tpu.memory_space<vmem>>, vector<1x32xf32>
    %192 = vector.broadcast %191 : vector<1x32xf32> to vector<8x32xf32>
    %193 = arith.addf %190, %192 : vector<8x32xf32>
    %c0_77 = arith.constant 0 : index
    %c0_78 = arith.constant 0 : index
    %194 = vector.load %arg18[%c0_77, %c0_78] : memref<8x32xf32, #tpu.memory_space<vmem>>, vector<8x32xf32>
    tpu.vector_store %arg18[%c0_77, %c0_78], %193 {strides = array<i32>} : memref<8x32xf32, #tpu.memory_space<vmem>>, vector<8x32xf32>,
    return
  }
  func.func @transform_0(%arg0: i32) -> (i32, i32) {
    %c0_i32 = arith.constant 0 : i32
    %c0_i32_0 = arith.constant 0 : i32
    return %arg0, %c0_i32 : i32, i32
  }
  func.func @transform_1(%arg0: i32) -> (i32, i32) {
    %c0_i32 = arith.constant 0 : i32
    %c0_i32_0 = arith.constant 0 : i32
    return %arg0, %c0_i32 : i32, i32
  }
  func.func @transform_2(%arg0: i32) -> (i32, i32) {
    %c0_i32 = arith.constant 0 : i32
    %c0_i32_0 = arith.constant 0 : i32
    %c0_i32_1 = arith.constant 0 : i32
    return %c0_i32, %c0_i32_0 : i32, i32
  }
  func.func @transform_3(%arg0: i32) -> (i32, i32) {
    %c0_i32 = arith.constant 0 : i32
    %c0_i32_0 = arith.constant 0 : i32
    %c0_i32_1 = arith.constant 0 : i32
    return %c0_i32, %c0_i32_0 : i32, i32
  }
  func.func @transform_4(%arg0: i32) -> (i32, i32) {
    %c0_i32 = arith.constant 0 : i32
    %c0_i32_0 = arith.constant 0 : i32
    %c0_i32_1 = arith.constant 0 : i32
    return %c0_i32, %c0_i32_0 : i32, i32
  }
  func.func @transform_5(%arg0: i32) -> (i32, i32) {
    %c0_i32 = arith.constant 0 : i32
    %c0_i32_0 = arith.constant 0 : i32
    %c0_i32_1 = arith.constant 0 : i32
    return %c0_i32, %c0_i32_0 : i32, i32
  }
  func.func @transform_6(%arg0: i32) -> (i32, i32) {
    %c0_i32 = arith.constant 0 : i32
    %c0_i32_0 = arith.constant 0 : i32
    %c0_i32_1 = arith.constant 0 : i32
    return %c0_i32, %c0_i32_0 : i32, i32
  }
  func.func @transform_7(%arg0: i32) -> (i32, i32, i32) {
    %c0_i32 = arith.constant 0 : i32
    %c0_i32_0 = arith.constant 0 : i32
    %c0_i32_1 = arith.constant 0 : i32
    %c0_i32_2 = arith.constant 0 : i32
    return %c0_i32, %c0_i32_0, %c0_i32_1 : i32, i32, i32
  }
  func.func @transform_8(%arg0: i32) -> (i32, i32) {
    %c0_i32 = arith.constant 0 : i32
    %c0_i32_0 = arith.constant 0 : i32
    %c0_i32_1 = arith.constant 0 : i32
    return %c0_i32, %c0_i32_0 : i32, i32
  }
  func.func @transform_9(%arg0: i32) -> (i32, i32) {
    %c0_i32 = arith.constant 0 : i32
    %c0_i32_0 = arith.constant 0 : i32
    %c0_i32_1 = arith.constant 0 : i32
    return %c0_i32, %c0_i32_0 : i32, i32
  }
  func.func @transform_10(%arg0: i32) -> (i32, i32) {
    %c0_i32 = arith.constant 0 : i32
    %c0_i32_0 = arith.constant 0 : i32
    %c0_i32_1 = arith.constant 0 : i32
    return %c0_i32, %c0_i32_0 : i32, i32
  }
  func.func @transform_11(%arg0: i32) -> (i32, i32) {
    %c0_i32 = arith.constant 0 : i32
    %c0_i32_0 = arith.constant 0 : i32
    %c0_i32_1 = arith.constant 0 : i32
    return %c0_i32, %c0_i32_0 : i32, i32
  }
  func.func @transform_12(%arg0: i32) -> (i32, i32) {
    %c0_i32 = arith.constant 0 : i32
    %c0_i32_0 = arith.constant 0 : i32
    %c0_i32_1 = arith.constant 0 : i32
    return %c0_i32, %c0_i32_0 : i32, i32
  }
  func.func @transform_13(%arg0: i32) -> (i32, i32) {
    %c0_i32 = arith.constant 0 : i32
    %c0_i32_0 = arith.constant 0 : i32
    %c0_i32_1 = arith.constant 0 : i32
    return %c0_i32, %c0_i32_0 : i32, i32
  }
  func.func @transform_14(%arg0: i32) -> (i32, i32) {
    %c0_i32 = arith.constant 0 : i32
    %c0_i32_0 = arith.constant 0 : i32
    %c0_i32_1 = arith.constant 0 : i32
    return %c0_i32, %c0_i32_0 : i32, i32
  }
  func.func @transform_15(%arg0: i32) -> (i32, i32) {
    %c0_i32 = arith.constant 0 : i32
    %c0_i32_0 = arith.constant 0 : i32
    %c0_i32_1 = arith.constant 0 : i32
    return %c0_i32, %c0_i32_0 : i32, i32
  }
  func.func @transform_16(%arg0: i32) -> (i32, i32) {
    %c0_i32 = arith.constant 0 : i32
    %c0_i32_0 = arith.constant 0 : i32
    %c0_i32_1 = arith.constant 0 : i32
    return %c0_i32, %c0_i32_0 : i32, i32
  }
  func.func @transform_17(%arg0: i32) -> (i32, i32) {
    %c0_i32 = arith.constant 0 : i32
    %c0_i32_0 = arith.constant 0 : i32
    return %arg0, %c0_i32 : i32, i32
  }
}

</mosaic_0001>

<bundles_post_ra>
// kernel: tpu_custom_call.1
= control target key start
LH: loop header
LB: loop body
LE: loop exit
PB: predicated region body
PF: predicated region fallthrough
CT: control target
= control target key end

     0   :  { %s1956_s0 = inlined_call_operand.vmem [shape: f32[16,32], index: 0, kind: input, shape index: {}]   ;;  %s1957_s1 = inlined_call_operand.vmem [shape: f32[16,1], index: 1, kind: input, shape index: {}]   ;;  %s1958_s2 = inlined_call_operand.vmem [shape: bf16[32,98], index: 2, kind: input, shape index: {}]   ;;  %s1959_s3 = inlined_call_operand.vmem [shape: f32[1,98], index: 3, kind: input, shape index: {}]   ;;  %s1960_s4 = inlined_call_operand.vmem [shape: f32[1,98], index: 4, kind: input, shape index: {}]   ;;  %s1961_s5 = inlined_call_operand.vmem [shape: f32[64,64], index: 5, kind: input, shape index: {}]   ;;  %s1962_s6 = inlined_call_operand.vmem [shape: f32[64,4], index: 6, kind: input, shape index: {}]   ;;  %s1963_s7 = inlined_call_operand.vmem [shape: bf16[2,16,32], index: 7, kind: input, shape index: {}]   ;;  %s1964_s8 = inlined_call_operand.vmem [shape: f32[1,32], index: 8, kind: input, shape index: {}]   ;;  %s1965_s9 = inlined_call_operand.vmem [shape: f32[1,32], index: 9, kind: input, shape index: {}]   ;;  %s1966_s10 = inlined_call_operand.vmem [shape: f32[1,32], index: 10, kind: input, shape index: {}]   ;;  %s1967_s11 = inlined_call_operand.hbm [shape: bf16[32,64], index: 11, kind: input, shape index: {}]   ;;  %s1968_s12 = inlined_call_operand.vmem [shape: f32[1,64], index: 12, kind: input, shape index: {}]   ;;  %s1969_s13 = inlined_call_operand.vmem [shape: bf16[64,32], index: 13, kind: input, shape index: {}]   ;;  %s1970_s14 = inlined_call_operand.vmem [shape: f32[1,32], index: 14, kind: input, shape index: {}]   ;;  %s1971_s15 = inlined_call_operand.vmem [shape: f32[1,32], index: 15, kind: input, shape index: {}]   ;;  %s1972_s16 = inlined_call_operand.vmem [shape: f32[1,32], index: 16, kind: input, shape index: {}]   ;;  %s1973_s17 = inlined_call_operand.hbm [shape: f32[16,32], index: 17, kind: output, shape index: {}]  }
   0x1   :  { %1983 = sst [smem:[#allocation15_spill]] %s1956_s0 }
   0x2   :  { %1984 = sst [smem:[#allocation16_spill]] %s1957_s1 }
   0x3   :  { %1985 = sst [smem:[#allocation17_spill]] %s1967_s11 }
   0x4   :  { %1986 = sst [smem:[#allocation18_spill]] %s1972_s16 }
   0x5   :  { %1987 = sst [smem:[#allocation19_spill]] %s1973_s17 }
   0x6   :  { %22 = vsyncpa [#allocation3], 0 }
   0x7   :  { %23 = vsyncpa [#allocation4], 0 }
   0x8   :  { %25 = vsyncpa [#allocation4 + $0x1], 0  ;;  %s1710_s24 = smov 0   ;;  %s1712_s25 = smov 0  }
   0x9   :  { %s1714_s26 = smov 0   ;;  %s1716_s27 = smov 0  }
   0xa LB: > { %1988 = sst [smem:[#allocation8_spill]] %s1592_s24  ;;  %s1731_s28 = sadd.s32 4294967295, %s1604_s27   ;;  %s1604_s27 = sphi %s1716_s27, %s2006_s27   ;;  %s1600_s26 = sphi %s1714_s26, %s2008_s26   ;;  %s1596_s25 = sphi %s1712_s25, %s2010_s25   ;;  %s1592_s24 = sphi %s1710_s24, %s2009_s24  }
   0xb   : > { %1989 = sst [smem:[#allocation9_spill]] %s1600_s26  ;;  %s1328_s29 = sadd.s32 4294967294, %s1604_s27  }
   0xc   : > { %1990 = sst [smem:[#allocation10_spill]] %s1604_s27  ;;  %s1735_s0 = sadd.s32 1, %s1604_s27  }
   0xd   : > { %1991 = sst [smem:[#allocation11_spill]] %s1735_s0  ;;  %s405_s30 = sadd.s32 1, %s1600_s26 }
   0xe   : > { %s402_s18 = ssub.s32 %s1604_s27, %s1735_s0  ;;  %p415_p0 = scmp.ne.s32.totalorder %s1600_s26, %s1596_s25 }
   0xf   : > { %p403_p1 = scmp.eq.s32.totalorder %s402_s18, 0  ;;  %p416_p2 = scmp.eq.s32.totalorder %s1731_s28, 1 }
  0x10   : > { %p421_p3 = scmp.ne.s32.totalorder %s1596_s25, %s1592_s24  ;;  %p422_p4 = scmp.eq.s32.totalorder %s1328_s29, 1 }
  0x11   : > { %s1746_s19 = scalar_select %p403_p1, %s1600_s26, %s405_s30  }
  0x12   : > { %p1748_p5 = por %p416_p2, %p415_p0  ;;  %p1752_p6 = por %p422_p4, %p421_p3 }
  0x13   : > { %1992 = sst [smem:[#allocation12_spill]] %s1746_s19  ;;  %p1329_p7 = scmp.ge.s32.totalorder %s1604_s27, 1 }
  0x14   : > { %s1993_s1 = scalar_select %p1748_p5, 1, 0 }
  0x15   : > { %s1995_s20 = scalar_select %p1752_p6, 1, 0 }
  0x16   : > { %1994 = sst [smem:[#allocation13_spill]] %s1993_s1  ;;  %p429_p8 = scmp.lt.s32.totalorder %s1604_s27, 3 }
  0x17   : > { %1996 = sst [smem:[#allocation14_spill]] %s1995_s20  ;;  %p1422_p9 = scmp.eq.s32.totalorder %s1731_s28, 0 }
  0x18   : > { %p430_p10 = pnand %p1329_p7, %p429_p8  ;;  %s1997_s11 = sld [smem:[#allocation17_spill]] }
  0x19   : > { %s1606_s29 = smov [#allocation2]   ;;  %s1607_s18 = smov 64  }
  0x1a   : > { %p1414_p11 = pneg %p430_p10  ;;  %s469_s30 = sshll.u32 %s1606_s29, 4  ;;  %s470_s30 = int_to_ptr.vmem [resolvable:$true] %s469_s30 }
  0x1b   : > { %s1608_s19 = smov 4   ;;  %514 = sbr.rel (%p430_p10) target bundleno = 2136 (0x858), region = 88 }
  0x1c   : > { %p1415_p12 = pnand %p1422_p9, %p1414_p11 }
  0x1e   : > { %s467_s23 = sshll.u32 %s1997_s11, 4  ;;  %s468_s23 = int_to_ptr.hbm [resolvable:$true] %s467_s23 }
  0x1f   : > { %1417 = dma.hbm_to_vmem [thread:$0]  (!%p1415_p12), %s468_s23, 256, %s470_s30, [#allocation3], %s1607_s18, %s1607_s18, %s1608_s19  }
  0x20   : > { %1583 = dma.done.wait (%p1422_p9), [#allocation3], 256  }
  0x21   : > { %1585 = vsyncadd (%p1422_p9), [#allocation3], 4294967040  ;;  %p570_p13 = scmp.lt.s32.totalorder %s1731_s28, 1  ;;  %v1609_v0 = vmov 0   ;;  %s1998_s26 = sld [smem:[#allocation16_spill]]  ;;  %v1399_v1 = vld [vmem:[%s1958_s2 + $0x8] sm:$0xff] }
  0x22   : > { %1472 = vset.pattern.permute.xlu0 %v1609_v0  ;;  %s1999_s30 = sld [smem:[#allocation15_spill]]  ;;  %v639_v3 = vld [vmem:[%s1961_s5 + $0x38] sm:$0xff]  ;;  %v638_v4 = vld [vmem:[%s1961_s5 + $0x30] sm:$0xff]  ;;  %612 = vmatpush.bf16.msra.mxu2 %v1399_v1  ;;  %v1398_v5 = vld [vmem:[%s1958_s2] sm:$0xff]  ;;  %vm602_vm0 = vcmask 261120   ;;  %vm640_vm1 = vcmask 523264  }
  0x23   : > { %s571_s21 = scalar_select %p570_p13, %s1731_s28, 1  ;;  %652 = vmatpush.msra.mxu1 %v639_v3  ;;  %v637_v8 = vld [vmem:[%s1961_s5 + $0x28] sm:$0xff]  ;;  %v672_v9 = vld [vmem:[%s1962_s6 + $0x38] sm:$0xff]  ;;  %v636_v10 = vld [vmem:[%s1961_s5 + $0x20] sm:$0xff]  ;;  %v1610_v33 = vmov 3   ;;  %v1611_v34 = vmov 2  }
  0x24   : > { %v671_v12 = vld [vmem:[%s1962_s6 + $0x30] sm:$0xff]  ;;  %v635_v13 = vld [vmem:[%s1961_s5 + $0x18] sm:$0xff]  ;;  %v670_v14 = vld [vmem:[%s1962_s6 + $0x28] sm:$0xff]  ;;  %1474 = vset.pattern.permute.xlu2 %v1610_v33  ;;  %1473 = vset.pattern.permute.xlu1 %v1611_v34  ;;  %vm712_vm2 = vcmask 392448   ;;  %s1612_s24 = smov 64   ;;  %v1613_v39 = vmov 1  }
  0x25   : > { %s1335_s22 = sshll.u32 %s571_s21, 3  ;;  %653 = vmatpush.msra.mxu1 %v638_v4  ;;  %v669_v15 = vld [vmem:[%s1962_s6 + $0x20] sm:$0xff]  ;;  %v634_v16 = vld [vmem:[%s1961_s5 + $0x10] sm:$0xff]  ;;  %v668_v17 = vld [vmem:[%s1962_s6 + $0x18] sm:$0xff]  ;;  %s1614_s20 = smov 47   ;;  %vm848_vm3 = vcmask 523648  }
  0x26   : > { %613 = vmatpush.bf16.msra.mxu2 %v1398_v5  ;;  %v633_v18 = vld [vmem:[%s1961_s5 + $0x8] sm:$0xff]  ;;  %v667_v19 = vld [vmem:[%s1962_s6 + $0x10] sm:$0xff]  ;;  %v632_v20 = vld [vmem:[%s1961_s5] sm:$0xff]  ;;  %vm839_vm4 = vcmask 261248   ;;  %s1615_s16 = smov 96   ;;  %s1616_s27 = smov 80  }
  0x27   : > { %s577_s0 = scalar_lea.vmem %s1998_s26, %s1335_s22  ;;  %654 = vmatpush.msra.mxu1 %v637_v8  ;;  %v666_v21 = vld [vmem:[%s1962_s6 + $0x8] sm:$0xff]  ;;  %v665_v22 = vld [vmem:[%s1962_s6] sm:$0xff]  ;;  %s1617_s17 = smov 112   ;;  %vm771_vm5 = vcmask 64512   ;;  %vm703_vm6 = vcmask 130048  }
  0x28   : > { %s573_s18 = scalar_lea.vmem %s1999_s30, %s1335_s22  ;;  %v580_v2 = vld [vmem:[%s577_s0] sm:$0xff]  ;;  %s567_s23 = sand.u32 1, %s1596_s25  }
  0x29   : > { %v1789_v6 = vld [vmem:[%s573_s18] sm:$0xff]  ;;  %v1346_v7 = vadd.f32 -1.0, %v580_v2  ;;  %655 = vmatpush.msra.mxu1 %v636_v10  ;;  %s1334_s30 = sshll.u32 %s567_s23, 3  ;;  %s1395_s18 = sshll.u32 %s1731_s28, 3 }
  0x2a   : > { %v581_v11 = vpack.c.bf16 %v1789_v6, %v1789_v6  ;;  %684 = vmatpush.msrb.mxu2 %v672_v9  ;;  %v1479_v23 = vld [vmem:[%s1960_s4] ss:$0 sm:$0xff]  ;;  %s2002_s21 = sld [smem:[#allocation18_spill]]  ;;  %s569_s22 = scalar_lea.vmem [#allocation5], %s1334_s30 }
  0x2b   : > { %626 = vperm.xlu0 %1472, %v1346_v7   ;;  %656 = vmatpush.msra.mxu1 %v635_v13  ;;  %v1480_v26 = vld [vmem:[%s1959_s3] ss:$0 sm:$0xff]  ;;  %s1242_s28 = sshll.u32 %s569_s22, 4  ;;  %s1230_s19 = scalar_lea.sflag [#allocation4], %s567_s23  ;;  %s1243_s28 = int_to_ptr.vmem [resolvable:$true] %s1242_s28 }
  0x2c   : > { %1345 = vmatmul.msk.bf16.vlgmr.msra.gmra.mxu2 %vm602_vm0, %v581_v11 }
  0x2d   : > { %685 = vmatpush.msrb.mxu2 %v671_v12  ;;  %657 = vmatpush.msra.mxu1 %v634_v16 }
  0x2f   : > { %686 = vmatpush.msrb.mxu2 %v670_v14  ;;  %658 = vmatpush.msra.mxu1 %v633_v18 }
  0x31   : > { %687 = vmatpush.msrb.mxu2 %v669_v15  ;;  %659 = vmatpush.msra.mxu1 %v632_v20 }
  0x33   : > { %688 = vmatpush.msrb.mxu2 %v668_v17 }
  0x35   : > { %689 = vmatpush.msrb.mxu2 %v667_v19 }
  0x37   : > { %690 = vmatpush.msrb.mxu2 %v666_v21 }
  0x39   : > { %691 = vmatpush.msrb.mxu2 %v665_v22 }
  0x9d   : > { %v627_v24 = vpop.permute.xlu0 %626 }
  0x9e   : > { %v629_v25 = vmul.f32 %v1479_v23, %v627_v24 }
  0xa0   : > { %v630_v27 = vadd.f32 1.0, %v629_v25 }
  0xaf   : > { %v615_v28 = vpop.f32.mrf.mxu2 }
  0xb0   : > { %v616_v29 = vadd.f32 %v1480_v26, %v615_v28 }
  0xb2   : > { %v631_v30 = vmul.f32 %v630_v27, %v616_v29 }
  0xb4   : > { %1347 = vmatmul.msk.f32.vlgmr.msra.gmra.mxu1 %vm640_vm1, %v631_v30  ;;  %v664_v31 = vmul.f32 %v631_v30, %v631_v30 }
  0xb6   : > { %1348 = vmatmul.msk.f32.vlgmr.msrb.gmra.mxu2 %vm640_vm1, %v664_v31 }
  0xb7   : > { %v617_v32 = vpop.f32.mrf.mxu2 }
 0x131   : > { %v1844_v35 = vpop.f32.mrf.mxu1 }
 0x132   : > { %v713_v36 = vsel %vm712_vm2, %v1844_v35, -inf  ;;  %v849_v40 = vsel %vm848_vm3, %v1844_v35, -inf  ;;  %v840_v46 = vsel %vm839_vm4, %v1844_v35, -inf  ;;  %v704_v22 = vsel %vm703_vm6, %v1844_v35, -inf }
 0x133   : > { %714 = vmax.xlane.f32.xlu0 %v713_v36 }
 0x139   : > { %v693_v37 = vpop.f32.mrf.mxu2 }
 0x13a   : > { %v1847_v38 = vmul.f32 0.5, %v693_v37 }
 0x13c   : > { %859 = vperm.xlu2 %1474, %v1847_v38   ;;  %723 = vperm.xlu1 %1473, %v1847_v38  }
 0x144   : > { %768 = vrot.lane.b32.xlu2 %v631_v30, %s1612_s24  ;;  %1475 = vset.pattern.permute.xlu1 %v1613_v39 }
 0x14c   : > { %904 = vrot.lane.b32.xlu2 %v631_v30, %s1614_s20 }
 0x166   : > { %850 = vmax.xlane.f32.xlu1 %v849_v40 }
 0x17f   : > { %835 = vperm.xlu1 %1475, %v1847_v38  }
 0x196   : > { %v860_v41 = vpop.permute.xlu2 %859 }
 0x197   : > { %v862_v2 = vsub.f32 %v1844_v35, %v860_v41 }
 0x19e   : > { %v769_v42 = vpop.permute.xlu2 %768 }
 0x19f   : > { %793 = vmatpush.msra.mxu3 %v769_v42  ;;  %v1400_v42 = vld [vmem:[%s1963_s7] sm:$0xff] }
 0x1a6   : > { %v905_v43 = vpop.permute.xlu2 %904  ;;  %v715_v44 = vpop.xlane.xlu0 %714 }
 0x1a7   : > { %v716_v45 = vrot.slane %v715_v44, 4  ;;  %928 = vmatpush.msra.mxu0 %v905_v43 }
 0x1a9   : > { %v717_v47 = vmax.f32 %v715_v44, %v716_v45  ;;  %841 = vmax.xlane.f32.xlu1 %v840_v46  ;;  %v1401_v46 = vld [vmem:[%s1963_s7 + $0x8] sm:$0xff] }
 0x1aa   : > { %988 = vmatpush.bf16.msra.mxu2 %v1401_v46  ;;  %v1404_v46 = vld [vmem:[%s1969_s13] sm:$0xff] }
 0x1ab   : > { %v718_v48 = vrot.slane %v717_v47, 2 }
 0x1ad   : > { %v719_v49 = vmax.f32 %v717_v47, %v718_v48 }
 0x1ae   : > { %v724_v50 = vpop.permute.xlu1 %723 }
 0x1af   : > { %v720_v51 = vrot.slane %v719_v49, 1  ;;  %v726_v53 = vsub.f32 %v1844_v35, %v724_v50 }
 0x1b1   : > { %v721_v52 = vmax.f32 %v719_v49, %v720_v51 }
 0x1b3   : > { %v727_v54 = vsub.f32 %v726_v53, %v721_v52  ;;  %v1481_v52 = vld [vmem:[%s1964_s8] ss:$0 sm:$0xff] }
 0x1b5   : > { %v728_v55 = vmul.f32 1.442695, %v727_v54 }
 0x1b7   : > { %1488 = vpow2.f32 %v728_v55 }
 0x1bd   : > { %v1489_v56 = vpop.eup %1488 }
 0x1be   : > { %v730_v57 = vadd.f32 0.0001, %v1489_v56 }
 0x1c0   : > { %v731_v58 = vmul.f32 0.25, %v730_v57 }
 0x1c2   : > { %733 = vrot.lane.b32.xlu2 %v731_v58, %s1615_s16  ;;  %s2000_s16 = sld [smem:[#allocation19_spill]] }
 0x1c8   : > { %s1558_s30 = scalar_lea.hbm %s2000_s16, 16 }
 0x1d9   : > { %v851_v59 = vpop.xlane.xlu1 %850 }
 0x1da   : > { %v852_v60 = vrot.slane %v851_v59, 4 }
 0x1dc   : > { %v853_v61 = vmax.f32 %v851_v59, %v852_v60  ;;  %v1619_v59 = vmov 32.0  }
 0x1de   : > { %v854_v62 = vrot.slane %v853_v61, 2 }
 0x1e0   : > { %v855_v63 = vmax.f32 %v853_v61, %v854_v62 }
 0x1e2   : > { %v856_v1 = vrot.slane %v855_v63, 1 }
 0x1e4   : > { %v857_v3 = vmax.f32 %v855_v63, %v856_v1 }
 0x1e6   : > { %v863_v4 = vsub.f32 %v862_v2, %v857_v3 }
 0x1e8   : > { %v864_v5 = vmul.f32 1.442695, %v863_v4 }
 0x1ea   : > { %1490 = vpow2.f32 %v864_v5 }
 0x1f0   : > { %v1491_v7 = vpop.eup %1490 }
 0x1f1   : > { %v866_v8 = vadd.f32 0.0001, %v1491_v7  ;;  %v836_v10 = vpop.permute.xlu1 %835 }
 0x1f2   : > { %v838_v11 = vsub.f32 %v1844_v35, %v836_v10 }
 0x1f3   : > { %v867_v9 = vmul.f32 0.25, %v866_v8  ;;  %v1403_v8 = vld [vmem:[#allocation2 + $0x8] sm:$0xff] }
 0x1f5   : > { %869 = vrot.lane.b32.xlu2 %v867_v9, %s1616_s27  ;;  %v1402_v9 = vld [vmem:[#allocation2] sm:$0xff]  ;;  %s1240_s27 = scalar_lea.hbm %s2000_s16, %s1395_s18 }
 0x1f6   : > { %s1244_s29 = sshll.u32 %s1240_s27, 4  ;;  %s1245_s29 = int_to_ptr.hbm [resolvable:$true] %s1244_s29 }
 0x1f7   : > { %s1552_s11 = sshra.s32 %s1245_s29, 4  ;;  %s1553_s11 = int_to_ptr.hbm [resolvable:$true] %s1552_s11 }
 0x1f8   : > { %s1554_s18 = scalar_lea.hbm %s1553_s11, 8  ;;  %p1559_p3 = scmp.lt.s32.totalorder %s1553_s11, %s2000_s16 }
 0x1f9   : > { %p1555_p0 = scmp.ne.s32.totalorder %s1553_s11, %s1554_s18  ;;  %p1560_p4 = scmp.lt.s32.totalorder %s1558_s30, %s1554_s18 }
 0x1fb   : > { %p1556_p1 = pnand %p1555_p0, %p1748_p5  ;;  %p1561_p7 = por %p1560_p4, %p1559_p3 }
 0x1fd   : > { %p1557_p2 = pneg %p1556_p1 }
 0x1ff   : > { %p1562_p8 = pnand %p1561_p7, %p1557_p2 }
 0x21c   : > { %v842_v12 = vpop.xlane.xlu1 %841  ;;  %v734_v13 = vpop.permute.xlu2 %733 }
 0x21d   : > { %v843_v14 = vsub.f32 %v838_v11, %v842_v12  ;;  %736 = vxpose.xlu2.b32.start.end [1/1] (short) (narrow) %v734_v13, 16 }
 0x21f   : > { %v844_v15 = vmul.f32 1.442695, %v843_v14 }
 0x221   : > { %1492 = vpow2.f32 %v844_v15 }
 0x227   : > { %v1493_v16 = vpop.eup %1492 }
 0x228   : > { %v846_v17 = vadd.f32 0.0001, %v1493_v16 }
 0x22a   : > { %v847_v18 = vmul.f32 0.25, %v846_v17 }
 0x22c   : > { %937 = vrot.lane.b32.xlu1 %v847_v18, %s1617_s17 }
 0x24f   : > { %v870_v19 = vpop.permute.xlu2 %869 }
 0x250   : > { %872 = vxpose.xlu0.b32.start.end [1/1] (short) (narrow) %v870_v19, 16  ;;  %v1482_v19 = vld [vmem:[%s1965_s9] ss:$0 sm:$0xff] }
 0x27f   : > { %1476 = vset.pattern.permute.xlu2 %v1609_v0 }
 0x28e   : > { %699 = vperm.xlu2 %1476, %v1847_v38  }
 0x29e   : > { %v938_v37 = vpop.permute.xlu1 %937 }
 0x2b6   : > { %v752_v20 = vpop.trf.xlu2 }
 0x2b7   : > { %1349 = vmatmul.msk.f32.vlgmr.msra.gmra.mxu3 %vm771_vm5, %v752_v20 }
 0x2be   : > { %v753_v21 = vpop.trf.xlu2 }
 0x2bf   : > { %1350 = vmatmul.msk.f32.gmra.mxu3 %vm771_vm5, %v753_v21  ;;  %v1483_v21 = vld [vmem:[%s1966_s10] ss:$0 sm:$0xff] }
 0x2c9   : > { %705 = vmax.xlane.f32.xlu0 %v704_v22 }
 0x2e8   : > { %v700_v25 = vpop.permute.xlu2 %699 }
 0x2e9   : > { %v702_v0 = vsub.f32 %v1844_v35, %v700_v25  ;;  %v1618_v35 = vmov 16  }
 0x2ea   : > { %1477 = vset.pattern.permute.xlu1 %v1618_v35  ;;  %1478 = vset.pattern.permute.xlu0 %v1618_v35  ;;  %v1406_v35 = vld [vmem:[%s1969_s13 + $0x10] sm:$0xff] }
 0x2f4   : > { %v888_v23 = vpop.trf.xlu0 }
 0x2f5   : > { %1352 = vmatmul.msk.f32.vlgmr.msra.gmra.mxu0 %vm771_vm5, %v888_v23 }
 0x2fc   : > { %v889_v24 = vpop.trf.xlu0 }
 0x2fd   : > { %1353 = vmatmul.msk.f32.gmra.mxu0 %vm771_vm5, %v889_v24 }
 0x33a   : > { %v795_v26 = vpop.f32.mrf.mxu3 }
 0x33c   : > { %v706_v27 = vpop.xlane.xlu0 %705 }
 0x33d   : > { %v707_v28 = vsub.f32 %v702_v0, %v706_v27 }
 0x33f   : > { %v708_v29 = vmul.f32 1.442695, %v707_v28 }
 0x341   : > { %1494 = vpow2.f32 %v708_v29 }
 0x342   : > { %v798_v30 = vpop.f32.mrf.mxu3 }
 0x343   : > { %818 = vmatpush.msrb.mxu3 %v798_v30 }
 0x345   : > { %819 = vmatpush.msrb.mxu3 %v795_v26  ;;  %v1484_v26 = vld [vmem:[%s1968_s12] ss:$0 sm:$0xff] }
 0x347   : > { %v1495_v31 = vpop.eup %1494  ;;  %1010 = vmatpush.bf16.msra.mxu3 %v1400_v42  ;;  %v1405_v42 = vld [vmem:[%s1969_s13 + $0x8] sm:$0xff] }
 0x348   : > { %v710_v32 = vadd.f32 0.0001, %v1495_v31 }
 0x34a   : > { %v711_v33 = vmul.f32 0.25, %v710_v32  ;;  %v1407_v32 = vld [vmem:[%s1969_s13 + $0x18] sm:$0xff] }
 0x34b   : > { %1186 = vmatpush.bf16.msrb.mxu0 %v1407_v32  ;;  %v1487_v32 = vld [vmem:[%s2002_s21] ss:$0 sm:$0xff] }
 0x34c   : > { %1351 = vmatmul.msk.f32.vlgmr.msrb.gmra.mxu3 %vm703_vm6, %v711_v33 }
 0x34f   : > { %1187 = vmatpush.bf16.msrb.mxu0 %v1406_v35 }
 0x353   : > { %1188 = vmatpush.bf16.msrb.mxu0 %v1405_v42 }
 0x357   : > { %1189 = vmatpush.bf16.msrb.mxu0 %v1404_v46 }
 0x372   : > { %v930_v34 = vpop.f32.mrf.mxu0 }
 0x37a   : > { %v933_v36 = vpop.f32.mrf.mxu0 }
 0x37b   : > { %955 = vmatpush.msrb.mxu1 %v933_v36 }
 0x37d   : > { %956 = vmatpush.msrb.mxu1 %v930_v34 }
 0x37e   : > { %1354 = vmatmul.msk.f32.vlgmr.msrb.gmra.mxu1 %vm703_vm6, %v938_v37 }
 0x37f   : > { %1091 = vmatpush.bf16.msra.mxu1 %v1403_v8 }
 0x383   : > { %1092 = vmatpush.bf16.msra.mxu1 %v1402_v9 }
 0x3cf   : > { %v821_v38 = vpop.f32.mrf.mxu3 }
 0x3d0   : > { %1496 = vrcp.f32 %v821_v38 }
 0x3d6   : > { %v1497_v39 = vpop.eup %1496 }
 0x3d7   : > { %827 = vperm.xlu1 %1477, %v1497_v39  }
 0x3fb   : > { %v958_v40 = vpop.f32.mrf.mxu1 }
 0x3fc   : > { %1498 = vrcp.f32 %v958_v40 }
 0x3fd   : > { %1500 = vrcp.f32 %v1619_v59 }
 0x402   : > { %v1499_v41 = vpop.eup %1498 }
 0x403   : > { %964 = vperm.xlu1 %1477, %v1499_v41   ;;  %v1501_v60 = vpop.eup %1500 }
 0x404   : > { %v1026_v61 = vmul.f32 32.0, %v1501_v60  ;;  %vm1030_vm7 = vweird.f32 %v1501_v60 }
 0x406   : > { %v1027_v62 = vsub.f32 1.0, %v1026_v61 }
 0x408   : > { %v1028_v63 = vmul.f32 %v1501_v60, %v1027_v62 }
 0x40a   : > { %v1029_v1 = vadd.f32 %v1501_v60, %v1028_v63 }
 0x40c   : > { %v1877_v2 = vsel %vm1030_vm7, %v1501_v60, %v1029_v1 }
 0x449   : > { %v828_v43 = vpop.permute.xlu1 %827 }
 0x44a   : > { %v830_v44 = vmul.f32 %v828_v43, %v821_v38 }
 0x44c   : > { %v831_v45 = vpack.c.bf16 %v830_v44, %v830_v44 }
 0x44e   : > { %1366 = vmatmul.msk.bf16.vlgmr.msra.gmra.mxu3 %vm703_vm6, %v831_v45 }
 0x475   : > { %v965_v47 = vpop.permute.xlu1 %964 }
 0x476   : > { %v967_v48 = vmul.f32 %v965_v47, %v958_v40 }
 0x478   : > { %v968_v49 = vpack.c.bf16 %v967_v48, %v967_v48 }
 0x47a   : > { %1361 = vmatmul.msk.bf16.vlgmr.msra.gmra.mxu2 %vm703_vm6, %v968_v49 }
 0x4d1   : > { %v1012_v50 = vpop.f32.mrf.mxu3 }
 0x4d9   : > { %v1014_v51 = vpop.f32.mrf.mxu3 }
 0x4fd   : > { %v990_v53 = vpop.f32.mrf.mxu2 }
 0x4fe   : > { %v1013_v54 = vadd.f32 %v1012_v50, %v990_v53 }
 0x500   : > { %v1020_v55 = vadd.f32 %v1481_v52, %v1013_v54 }
 0x502   : > { %v1021_v56 = vadd.f32 %v1020_v55, %v1789_v6 }
 0x504   : > { %v1022_v57 = vsel %vm602_vm0, %v1021_v56, 0.0 }
 0x505   : > { %1023 = vadd.xlane.f32.xlu1 %v1022_v57  ;;  %v992_v58 = vpop.f32.mrf.mxu2 }
 0x578   : > { %v1024_v3 = vpop.xlane.xlu1 %1023 }
 0x579   : > { %v1032_v4 = vmul.f32 %v1877_v2, %v1024_v3 }
 0x57b   : > { %v1033_v5 = vsub.f32 %v1021_v56, %v1032_v4 }
 0x57d   : > { %v1034_v7 = vmul.f32 %v1033_v5, %v1033_v5 }
 0x57f   : > { %v1035_v6 = vsel %vm602_vm0, %v1034_v7, 0.0 }
 0x580   : > { %1036 = vadd.xlane.f32.xlu2 %v1035_v6 }
 0x5f3   : > { %v1037_v10 = vpop.xlane.xlu2 %1036 }
 0x5f4   : > { %v1038_v11 = vmul.f32 %v1037_v10, %v1877_v2 }
 0x5f6   : > { %v1039_v12 = vadd.f32 1e-05, %v1038_v11  ;;  %v1485_v11 = vld [vmem:[%s1970_s14] ss:$0 sm:$0xff] }
 0x5f8   : > { %1502 = vrsqrt.f32 %v1039_v12  ;;  %vm1046_vm9 = vweird.f32 %v1039_v12 }
 0x5fe   : > { %v1503_v13 = vpop.eup %1502 }
 0x5ff   : > { %v1041_v14 = vmul.f32 %v1503_v13, %v1039_v12  ;;  %vm1047_vm8 = vweird.f32 %v1503_v13 }
 0x600   : > { %vm1048_vm10 = vmor %vm1046_vm9, %vm1047_vm8 }
 0x601   : > { %v1042_v15 = vmul.f32 %v1503_v13, %v1041_v14 }
 0x603   : > { %v1043_v16 = vmul.f32 0.5, %v1042_v15 }
 0x605   : > { %v1044_v17 = vsub.f32 1.5, %v1043_v16 }
 0x607   : > { %v1045_v18 = vmul.f32 %v1503_v13, %v1044_v17 }
 0x609   : > { %v1049_v20 = vsel %vm1048_vm10, %v1503_v13, %v1045_v18 }
 0x60a   : > { %v1050_v22 = vmul.f32 %v1049_v20, %v1033_v5 }
 0x60c   : > { %v1055_v23 = vmul.f32 %v1482_v19, %v1050_v22 }
 0x60e   : > { %v1888_v24 = vadd.f32 %v1483_v21, %v1055_v23 }
 0x610   : > { %v1061_v25 = vpack.c.bf16 %v1888_v24, %v1888_v24 }
 0x612   : > { %1375 = vmatmul.msk.bf16.vlgmr.msra.gmra.mxu1 %vm602_vm0, %v1061_v25 }
 0x68f   : > { %v1094_v0 = vpop.f32.mrf.mxu1 }
 0x690   : > { %v1095_v27 = vadd.f32 %v1484_v26, %v1094_v0 }
 0x692   : > { %v1099_v28 = vmul.f32 0.70710677, %v1095_v27  ;;  %v1098_v6 = vmul.f32 0.5, %v1095_v27 }
 0x694   : > { %v1100_v29 = vmul.f32 %v1099_v28, %v1099_v28 }
 0x696   : > { %v1101_v30 = vmin.f32 %v1100_v29, 16.0 }
 0x697   : > { %v1096_v31 = vpop.f32.mrf.mxu1 }
 0x698   : > { %v1102_v33 = vmul.f32 2.1237322e-06, %v1101_v30  ;;  %v1113_v34 = vmul.f32 3.8918573e-05, %v1101_v30 }
 0x69a   : > { %v1103_v36 = vadd.f32 0.00028619796, %v1102_v33  ;;  %v1114_v37 = vadd.f32 0.001143296, %v1113_v34 }
 0x69c   : > { %v1104_v38 = vmul.f32 %v1103_v36, %v1101_v30  ;;  %v1115_v39 = vmul.f32 %v1114_v37, %v1101_v30 }
 0x69e   : > { %v1116_v40 = vadd.f32 0.014752088, %v1115_v39  ;;  %v1105_v41 = vadd.f32 0.0036580483, %v1104_v38 }
 0x6a0   : > { %v1117_v43 = vmul.f32 %v1116_v40, %v1101_v30  ;;  %v1106_v45 = vmul.f32 %v1105_v41, %v1101_v30 }
 0x6a2   : > { %v1118_v44 = vadd.f32 0.112945676, %v1117_v43  ;;  %v1107_v49 = vadd.f32 0.05243302, %v1106_v45 }
 0x6a4   : > { %v1119_v47 = vmul.f32 %v1118_v44, %v1101_v30  ;;  %v1108_v52 = vmul.f32 %v1107_v49, %v1101_v30 }
 0x6a6   : > { %v1120_v48 = vadd.f32 0.4994258, %v1119_v47  ;;  %v1109_v53 = vadd.f32 0.18741608, %v1108_v52 }
 0x6a8   : > { %v1121_v50 = vmul.f32 %v1120_v48, %v1101_v30  ;;  %v1110_v55 = vmul.f32 %v1109_v53, %v1101_v30  ;;  %v1486_v30 = vld [vmem:[%s1971_s15] ss:$0 sm:$0xff] }
 0x6aa   : > { %v1122_v51 = vadd.f32 1.0, %v1121_v50  ;;  %v1111_v59 = vadd.f32 1.1283791, %v1110_v55 }
 0x6ac   : > { %1504 = vrcp.f32 %v1122_v51  ;;  %v1134_v58 = vand.u32 2147483648, %v1122_v51  ;;  %v1132_v61 = vand.u32 2147483647, %v1122_v51  ;;  %vm1128_vm12 = vweird.f32 %v1122_v51 }
 0x6ad   : > { %v1112_v1 = vmul.f32 %v1111_v59, %v1099_v28 }
 0x6ae   : > { %v1135_v63 = vor.u32 1.1754944e-38, %v1134_v58  ;;  %vm1133_vm14 = vcmp.eq.f32.partialorder %v1132_v61, 8.507059e+37 }
 0x6b2   : > { %v1505_v54 = vpop.eup %1504 }
 0x6b3   : > { %v1124_v56 = vmul.f32 %v1505_v54, %v1122_v51  ;;  %vm1129_vm11 = vweird.f32 %v1505_v54 }
 0x6b4   : > { %vm1130_vm13 = vmor %vm1128_vm12, %vm1129_vm11 }
 0x6b5   : > { %v1125_v57 = vsub.f32 1.0, %v1124_v56 }
 0x6b7   : > { %v1126_v60 = vmul.f32 %v1505_v54, %v1125_v57 }
 0x6b9   : > { %v1127_v62 = vadd.f32 %v1505_v54, %v1126_v60 }
 0x6bb   : > { %v1131_v3 = vsel %vm1130_vm13, %v1505_v54, %v1127_v62 }
 0x6bc   : > { %v1136_v4 = vsel %vm1133_vm14, %v1135_v63, %v1131_v3 }
 0x6bd   : > { %v1137_v5 = vmul.f32 %v1136_v4, %v1112_v1 }
 0x6bf   : > { %v1376_v7 = vclamps-f32 %v1137_v5, 1.0 }
 0x6c1   : > { %v1140_v8 = vadd.f32 1.0, %v1376_v7 }
 0x6c3   : > { %v1141_v9 = vmul.f32 %v1140_v8, %v1098_v6 }
 0x6c5   : > { %v1142_v10 = vpack.c.bf16 %v1141_v9, %v1141_v9 }
 0x6c7   : > { %1393 = vmatmul.msk.bf16.vlgmr.msrb.gmra.mxu0 %vm640_vm1, %v1142_v10 }
 0x744   : > { %v1191_v12 = vpop.f32.mrf.mxu0 }
 0x745   : > { %v1192_v13 = vadd.f32 %v1485_v11, %v1191_v12 }
 0x747   : > { %v1195_v14 = vadd.f32 %v1192_v13, %v1888_v24 }
 0x749   : > { %v1196_v15 = vsel %vm602_vm0, %v1195_v14, 0.0 }
 0x74a   : > { %1197 = vadd.xlane.f32.xlu1 %v1196_v15 }
 0x74c   : > { %v1193_v16 = vpop.f32.mrf.mxu0 }
 0x7bd   : > { %v1198_v17 = vpop.xlane.xlu1 %1197 }
 0x7be   : > { %v1199_v18 = vmul.f32 %v1198_v17, %v1877_v2 }
 0x7c0   : > { %v1200_v19 = vsub.f32 %v1195_v14, %v1199_v18 }
 0x7c2   : > { %v1201_v20 = vmul.f32 %v1200_v19, %v1200_v19 }
 0x7c4   : > { %v1202_v21 = vsel %vm602_vm0, %v1201_v20, 0.0 }
 0x7c5   : > { %1203 = vadd.xlane.f32.xlu1 %v1202_v21 }
 0x838   : > { %v1204_v22 = vpop.xlane.xlu1 %1203 }
 0x839   : > { %v1205_v23 = vmul.f32 %v1204_v22, %v1877_v2 }
 0x83b   : > { %v1206_v25 = vadd.f32 1e-05, %v1205_v23 }
 0x83d   : > { %1506 = vrsqrt.f32 %v1206_v25  ;;  %vm1213_vm1 = vweird.f32 %v1206_v25 }
 0x843   : > { %v1507_v24 = vpop.eup %1506 }
 0x844   : > { %v1208_v26 = vmul.f32 %v1507_v24, %v1206_v25  ;;  %vm1214_vm15 = vweird.f32 %v1507_v24 }
 0x845   : > { %vm1215_vm2 = vmor %vm1213_vm1, %vm1214_vm15 }
 0x846   : > { %v1209_v0 = vmul.f32 %v1507_v24, %v1208_v26 }
 0x848   : > { %v1210_v27 = vmul.f32 0.5, %v1209_v0 }
 0x84a   : > { %v1211_v28 = vsub.f32 1.5, %v1210_v27 }
 0x84c   : > { %v1212_v29 = vmul.f32 %v1507_v24, %v1211_v28 }
 0x84e   : > { %v1216_v2 = vsel %vm1215_vm2, %v1507_v24, %v1212_v29 }
 0x84f   : > { %v1217_v31 = vmul.f32 %v1216_v2, %v1200_v19 }
 0x851   : > { %v1222_v33 = vmul.f32 %v1486_v30, %v1217_v31 }
 0x853   : > { %v1227_v34 = vadd.f32 %v1487_v32, %v1222_v33 }
 0x855   : > { %1228 = vst.msk [vmem:[%s569_s22] sm:$0xff] %vm602_vm0, %v1227_v34 }
 0x856   : > { %1565 = shalt.err (!%p1562_p8)
}
 0x857   : > { %1412 = dma.vmem_to_hbm [thread:$0]  (%p1748_p5), %s1243_s28, 128, %s1245_s29, %s1230_s19  }
 0x858 PF: > { %s2003_s23 = sld [smem:[#allocation10_spill]] }
 0x859   : > { %s2004_s0 = sld [smem:[#allocation8_spill]] }
 0x85e   : > { %p1424_p9 = scmp.ge.s32.totalorder %s2003_s23, 2 }
 0x85f   : > { %s1256_s21 = sand.u32 1, %s2004_s0  }
 0x860   : > { %p1419_p10 = pnand %p1424_p9, %p1752_p6  ;;  %s1257_s22 = scalar_lea.sflag [#allocation4], %s1256_s21 }
 0x862   : > { %p1420_p11 = pneg %p1419_p10 }
 0x864   : > { %1587 = dma.done.wait (%p1420_p11), %s1257_s22, 128  }
 0x865   : > { %1589 = vsyncadd (%p1420_p11), %s1257_s22, 4294967168  ;;  %s2006_s27 = sld [smem:[#allocation11_spill]]  ;;  %s2009_s24 = smov %s1596_s25 }
 0x866   : > { %s2007_s11 = sld [smem:[#allocation9_spill]] }
 0x867   : > { %s2008_s26 = sld [smem:[#allocation12_spill]] }
 0x86b   : > { %p28_p12 = scmp.ge.s32.totalorder %s2006_s27, 4  }
 0x86c   : > { %s2010_s25 = smov %s2007_s11 }
 0x86d   :  { %30 = sbr.rel (!%p28_p12) target bundleno = 10 (0xa), region = 132 }
 0x872   :  { %1263 = vsyncpa [#allocation3], 1 }
 0x873   :  { %1265 = vsyncpa [#allocation3 + $0x1], 1 }
 0x874   :  { %1266 = vsyncpa [#allocation4], 1 }
 0x875   :  { %1268 = vsyncpa [#allocation4 + $0x1], 1 }

</bundles_post_ra>
